<compile_context>
chip_gen: v6e
topology: v6e:2x2x1
jax: 0.10.0
libtpu: 0.0.40
codegen_flags: <defaults>
</compile_context>

<pallas_src>
import jax
import jax.numpy as jnp
from jax.experimental import pallas as pl
from jax.experimental.pallas import tpu as pltpu

_SMOOTH = 1e-5
_LANES = 128


def _cdiv(a, b):
    return -(-a // b)


def _make_dice_partial_kernel(n_classes, ts, rs, hw, need_mask, apply_softmax):
    """Kernel producing per-batch partial sums (intersect, z, y) per class.

    Output block: (1, 3, C, rs, 128) float32, resident across the spatial
    (reduction) grid axis and used directly as the accumulator.
    """
    C = n_classes
    groups = ts // rs  # ts is always an exact multiple of rs

    def kernel(x_ref, t_ref, out_ref):
        j = pl.program_id(1)

        @pl.when(j == 0)
        def _init():
            out_ref[...] = jnp.zeros_like(out_ref)

        if need_mask:
            # Hoisted iotas; per-chunk masking is a single compare below.
            sub = jax.lax.broadcasted_iota(jnp.int32, (rs, _LANES), 0)
            lane = jax.lax.broadcasted_iota(jnp.int32, (rs, _LANES), 1)
            base_pos = (j * ts + sub) * _LANES + lane  # position at chunk 0

        # Per-step partial sums kept in vregs (3 quantities x C classes).
        acc = [[jnp.zeros((rs, _LANES), jnp.float32) for _ in range(C)]
               for _ in range(3)]

        for g in range(groups):
            row0 = g * rs  # static, vreg-row aligned

            t = t_ref[0, pl.ds(row0, rs), :]  # (rs, 128) int32 class indices
            xs = [x_ref[0, c, pl.ds(row0, rs), :].astype(jnp.float32)
                  for c in range(C)]

            valid = None
            if need_mask:
                # Mask padded lanes (H*W not a multiple of 128) and the ragged
                # tail of the last spatial block (out-of-bounds block rows).
                valid = base_pos < (hw - row0 * _LANES)
                xs = [jnp.where(valid, v, 0.0) for v in xs]

            if apply_softmax:
                # Softmax over the class axis: elementwise max/add across the
                # C chunks (VPU only), exp + reciprocal on the EUP.
                m = xs[0]
                for c in range(1, C):
                    m = jnp.maximum(m, xs[c])
                es = [jnp.exp(v - m) for v in xs]
                den = es[0]
                for c in range(1, C):
                    den = den + es[c]
                inv = pl.reciprocal(den, approx=True)  # EUP, off the VALU slots
                xs = [e * inv for e in es]
                if valid is not None:
                    xs = [jnp.where(valid, v, 0.0) for v in xs]

            for c in range(C):
                hit = t == c
                if valid is not None:
                    hit = jnp.logical_and(hit, valid)
                hitf = hit.astype(jnp.float32)
                sc = xs[c]
                acc[0][c] = acc[0][c] + sc * hitf   # intersect
                acc[1][c] = acc[1][c] + sc * sc     # z_sum
                acc[2][c] = acc[2][c] + hitf        # y_sum

        # One lane/sublane-dense load-add-store per (quantity, class) per step.
        for q in range(3):
            for c in range(C):
                out_ref[0, q, c] += acc[q][c]

    return kernel


def dice_loss_pallas(inputs, target, weight=None, softmax=False,
                     lane_tile=65536, vmem_budget_bytes=10 << 20):
    """inputs: (B, C, H, W) logits/scores (NCHW, like PyTorch); target:
    (B, H, W) integer class indices.  Returns scalar float32 loss equal to
    DiceLoss.forward."""
    B, C, H, W = inputs.shape
    assert target.shape == (B, H, W)
    hw = H * W
    n_rows = _cdiv(hw, _LANES)

    # Free (metadata-only) reshapes -- no transpose, no full-array copy.
    x = inputs.reshape(B, C, hw)
    t = target.astype(jnp.int32).reshape(B, hw)
    pad = n_rows * _LANES - hw
    if pad:
        # Only when H*W is not a multiple of 128; padded region is also
        # masked inside the kernel.
        x = jnp.pad(x, ((0, 0), (0, 0), (0, pad)))
        t = jnp.pad(t, ((0, 0), (0, pad)), constant_values=-1)
    x = x.reshape(B, C, n_rows, _LANES)
    t = t.reshape(B, n_rows, _LANES)

    # Tile selection: largest multiple-of-8 row count under both the lane_tile
    # target and the VMEM budget for double-buffered inputs; fall back to the
    # full row count for small images (always a legal block shape).
    ts = max(8, (lane_tile // _LANES) // 8 * 8)
    per_row_bytes = 2 * _LANES * (C * x.dtype.itemsize + 4)  # 2x buffered x + t
    cap = max(8, (vmem_budget_bytes // per_row_bytes) // 8 * 8)
    ts = min(ts, cap)
    if n_rows < ts:
        ts = n_rows
    rs = 8 if ts % 8 == 0 else ts
    n_j = _cdiv(n_rows, ts)
    need_mask = (pad != 0) or (n_rows % ts != 0)

    kernel = _make_dice_partial_kernel(C, ts, rs, hw, need_mask, softmax)

    partials = pl.pallas_call(
        kernel,
        out_shape=jax.ShapeDtypeStruct((B, 3, C, rs, _LANES), jnp.float32),
        grid_spec=pltpu.PrefetchScalarGridSpec(
            num_scalar_prefetch=0,
            grid=(B, n_j),
            in_specs=[
                pl.BlockSpec((1, C, ts, _LANES), lambda b, j: (b, 0, j, 0)),
                pl.BlockSpec((1, ts, _LANES), lambda b, j: (b, j, 0)),
            ],
            out_specs=pl.BlockSpec((1, 3, C, rs, _LANES),
                                   lambda b, j: (b, 0, 0, 0, 0)),
        ),
        compiler_params=pltpu.CompilerParams(
            # Batch axis is independent per-batch work -> parallel (lets v7x
            # use both TensorCores); spatial reduction axis carries the
            # output accumulator -> arbitrary.
            dimension_semantics=("parallel", "arbitrary")),
    )(x, t)

    # Tiny O(B*C*1024) epilogue: reduce the lane-dense partials and combine
    # into the scalar loss exactly as the PyTorch module does.
    sums = jnp.sum(partials, axis=(0, 3, 4))          # (3, C)
    intersect, z_sum, y_sum = sums[0], sums[1], sums[2]
    dice = 1.0 - (2.0 * intersect + _SMOOTH) / (z_sum + y_sum + _SMOOTH)
    if weight is None:
        w = jnp.ones((C,), jnp.float32)
    else:
        w = jnp.asarray(weight, jnp.float32).reshape(C)
    # TODO(synk): the module's `class_wise_dice` list (per-class .item()
    # bookkeeping) is host-side side-effect; only the returned scalar loss is
    # computed here.
    return jnp.sum(dice * w) / C


def dice_loss_ref(inputs, target, weight=None, softmax=False):
    """Pure-JAX reference mirroring the PyTorch DiceLoss module."""
    n_classes = inputs.shape[1]
    if softmax:
        inputs = jax.nn.softmax(inputs, axis=1)
    onehot = jax.nn.one_hot(target, n_classes, axis=1, dtype=jnp.float32)
    if weight is None:
        weight = [1.0] * n_classes
    loss = 0.0
    for i in range(n_classes):
        s = inputs[:, i].astype(jnp.float32)
        tt = onehot[:, i]
        inter = jnp.sum(s * tt)
        y = jnp.sum(tt * tt)
        z = jnp.sum(s * s)
        dice = 1.0 - (2.0 * inter + _SMOOTH) / (z + y + _SMOOTH)
        loss = loss + dice * weight[i]
    return loss / n_classes


if __name__ == "__main__":
    key = jax.random.PRNGKey(0)
    B, C, H, W = 2, 4, 16, 16
    k1, k2 = jax.random.split(key)
    logits = jax.random.normal(k1, (B, C, H, W), dtype=jnp.float32)
    target = jax.random.randint(k2, (B, H, W), 0, C, dtype=jnp.int32)

    # softmax=True path (typical usage during training)
    loss_soft = jax.block_until_ready(
        dice_loss_pallas(logits, target, softmax=True))
    ref_soft = dice_loss_ref(logits, target, softmax=True)

    # softmax=False path with per-class weights (module default pass-through)
    probs = jax.nn.softmax(logits, axis=1)
    wts = [1.0, 2.0, 0.5, 1.5]
    loss_raw = jax.block_until_ready(
        dice_loss_pallas(probs, target, weight=wts, softmax=False))
    ref_raw = dice_loss_ref(probs, target, weight=wts, softmax=False)

    # ragged spatial size (H*W not a multiple of 128) exercises in-kernel masking
    H2, W2 = 12, 12
    k3, k4 = jax.random.split(k1)
    logits2 = jax.random.normal(k3, (B, C, H2, W2), dtype=jnp.float32)
    target2 = jax.random.randint(k4, (B, H2, W2), 0, C, dtype=jnp.int32)
    loss_m = jax.block_until_ready(
        dice_loss_pallas(logits2, target2, softmax=True))
    ref_m = dice_loss_ref(logits2, target2, softmax=True)

    # small lane_tile forces a multi-step spatial grid + multi-chunk inner
    # loop, exercising the cross-step output accumulation path on small data.
    H3, W3 = 64, 64
    k5, k6 = jax.random.split(k2)
    logits3 = jax.random.normal(k5, (B, C, H3, W3), dtype=jnp.float32)
    target3 = jax.random.randint(k6, (B, H3, W3), 0, C, dtype=jnp.int32)
    loss_g = jax.block_until_ready(
        dice_loss_pallas(logits3, target3, softmax=True, lane_tile=2048))
    ref_g = dice_loss_ref(logits3, target3, softmax=True)

    # softmax paths use the approximate EUP reciprocal -> slightly looser rtol.
    assert jnp.allclose(loss_soft, ref_soft, rtol=1e-3, atol=1e-5), (
        loss_soft, ref_soft)
    assert jnp.allclose(loss_raw, ref_raw, rtol=1e-4, atol=1e-5), (
        loss_raw, ref_raw)
    assert jnp.allclose(loss_m, ref_m, rtol=1e-3, atol=1e-5), (
        loss_m, ref_m)
    assert jnp.allclose(loss_g, ref_g, rtol=1e-3, atol=1e-5), (
        loss_g, ref_g)

    print("KERNEL_OK")
</pallas_src>

<mosaic_0001>
module attributes {stable_mosaic.version = 11 : i64} {
  func.func @kernel(%arg0: i32, %arg1: i32, %arg2: memref<1x4x2x128xf32, #tpu.memory_space<vmem>>, %arg3: memref<1x2x128xi32, #tpu.memory_space<vmem>>, %arg4: memref<1x3x4x2x128xf32, #tpu.memory_space<vmem>>) attributes {dimension_semantics = [#tpu.dimension_semantics<parallel>, #tpu.dimension_semantics<arbitrary>], iteration_bounds = array<i64: 2, 1>, scalar_prefetch = 0 : i64, scratch_operands = 0 : i64, tpu.core_type = #tpu.core_type<tc>, window_params = [{transform_indices = @transform_0, window_bounds = array<i64: 1, 4, 2, 128>}, {transform_indices = @transform_1, window_bounds = array<i64: 1, 2, 128>}, {transform_indices = @transform_2, window_bounds = array<i64: 1, 3, 4, 2, 128>}]} {
    %c0_i32 = arith.constant 0 : i32
    %0 = arith.cmpi eq, %arg1, %c0_i32 : i32
    %1 = arith.extui %0 : i1 to i32
    %c0_i32_0 = arith.constant 0 : i32
    %2 = arith.cmpi ne, %1, %c0_i32_0 : i32
    scf.if %2 {
      %cst_148 = arith.constant 0.000000e+00 : f32
      %152 = vector.broadcast %cst_148 : f32 to vector<1x3x4x2x128xf32>
      %c0_149 = arith.constant 0 : index
      %c0_150 = arith.constant 0 : index
      %c0_151 = arith.constant 0 : index
      %c0_152 = arith.constant 0 : index
      %c0_153 = arith.constant 0 : index
      %153 = vector.load %arg4[%c0_149, %c0_150, %c0_151, %c0_152, %c0_153] : memref<1x3x4x2x128xf32, #tpu.memory_space<vmem>>, vector<1x3x4x2x128xf32>
      tpu.vector_store %arg4[%c0_149, %c0_150, %c0_151, %c0_152, %c0_153], %152 {strides = array<i32>} : memref<1x3x4x2x128xf32, #tpu.memory_space<vmem>>, vector<1x3x4x2x128xf32>,
    } else {
    }
    %cst = arith.constant 0.000000e+00 : f32
    %3 = vector.broadcast %cst : f32 to vector<2x128xf32>
    %cst_1 = arith.constant 0.000000e+00 : f32
    %4 = vector.broadcast %cst_1 : f32 to vector<2x128xf32>
    %cst_2 = arith.constant 0.000000e+00 : f32
    %5 = vector.broadcast %cst_2 : f32 to vector<2x128xf32>
    %cst_3 = arith.constant 0.000000e+00 : f32
    %6 = vector.broadcast %cst_3 : f32 to vector<2x128xf32>
    %cst_4 = arith.constant 0.000000e+00 : f32
    %7 = vector.broadcast %cst_4 : f32 to vector<2x128xf32>
    %cst_5 = arith.constant 0.000000e+00 : f32
    %8 = vector.broadcast %cst_5 : f32 to vector<2x128xf32>
    %cst_6 = arith.constant 0.000000e+00 : f32
    %9 = vector.broadcast %cst_6 : f32 to vector<2x128xf32>
    %cst_7 = arith.constant 0.000000e+00 : f32
    %10 = vector.broadcast %cst_7 : f32 to vector<2x128xf32>
    %cst_8 = arith.constant 0.000000e+00 : f32
    %11 = vector.broadcast %cst_8 : f32 to vector<2x128xf32>
    %cst_9 = arith.constant 0.000000e+00 : f32
    %12 = vector.broadcast %cst_9 : f32 to vector<2x128xf32>
    %cst_10 = arith.constant 0.000000e+00 : f32
    %13 = vector.broadcast %cst_10 : f32 to vector<2x128xf32>
    %cst_11 = arith.constant 0.000000e+00 : f32
    %14 = vector.broadcast %cst_11 : f32 to vector<2x128xf32>
    %c0 = arith.constant 0 : index
    %c0_12 = arith.constant 0 : index
    %c0_13 = arith.constant 0 : index
    %15 = vector.load %arg3[%c0, %c0_12, %c0_13] : memref<1x2x128xi32, #tpu.memory_space<vmem>>, vector<1x2x128xi32>
    %16 = vector.shape_cast %15 : vector<1x2x128xi32> to vector<2x128xi32>
    %c0_14 = arith.constant 0 : index
    %c0_15 = arith.constant 0 : index
    %c0_16 = arith.constant 0 : index
    %c0_17 = arith.constant 0 : index
    %17 = vector.load %arg2[%c0_14, %c0_15, %c0_16, %c0_17] : memref<1x4x2x128xf32, #tpu.memory_space<vmem>>, vector<1x1x2x128xf32>
    %18 = vector.shape_cast %17 : vector<1x1x2x128xf32> to vector<2x128xf32>
    %c0_18 = arith.constant 0 : index
    %c1 = arith.constant 1 : index
    %c0_19 = arith.constant 0 : index
    %c0_20 = arith.constant 0 : index
    %19 = vector.load %arg2[%c0_18, %c1, %c0_19, %c0_20] : memref<1x4x2x128xf32, #tpu.memory_space<vmem>>, vector<1x1x2x128xf32>
    %20 = vector.shape_cast %19 : vector<1x1x2x128xf32> to vector<2x128xf32>
    %c0_21 = arith.constant 0 : index
    %c2 = arith.constant 2 : index
    %c0_22 = arith.constant 0 : index
    %c0_23 = arith.constant 0 : index
    %21 = vector.load %arg2[%c0_21, %c2, %c0_22, %c0_23] : memref<1x4x2x128xf32, #tpu.memory_space<vmem>>, vector<1x1x2x128xf32>
    %22 = vector.shape_cast %21 : vector<1x1x2x128xf32> to vector<2x128xf32>
    %c0_24 = arith.constant 0 : index
    %c3 = arith.constant 3 : index
    %c0_25 = arith.constant 0 : index
    %c0_26 = arith.constant 0 : index
    %23 = vector.load %arg2[%c0_24, %c3, %c0_25, %c0_26] : memref<1x4x2x128xf32, #tpu.memory_space<vmem>>, vector<1x1x2x128xf32>
    %24 = vector.shape_cast %23 : vector<1x1x2x128xf32> to vector<2x128xf32>
    %25 = arith.maximumf %18, %20 : vector<2x128xf32>
    %26 = arith.maximumf %25, %22 : vector<2x128xf32>
    %27 = arith.maximumf %26, %24 : vector<2x128xf32>
    %28 = arith.subf %18, %27 : vector<2x128xf32>
    %29 = math.exp %28 : vector<2x128xf32>
    %30 = arith.subf %20, %27 : vector<2x128xf32>
    %31 = math.exp %30 : vector<2x128xf32>
    %32 = arith.subf %22, %27 : vector<2x128xf32>
    %33 = math.exp %32 : vector<2x128xf32>
    %34 = arith.subf %24, %27 : vector<2x128xf32>
    %35 = math.exp %34 : vector<2x128xf32>
    %36 = arith.addf %29, %31 : vector<2x128xf32>
    %37 = arith.addf %36, %33 : vector<2x128xf32>
    %38 = arith.addf %37, %35 : vector<2x128xf32>
    %39 = tpu.reciprocal %38 {approx = true} : vector<2x128xf32> -> vector<2x128xf32>
    %40 = arith.mulf %29, %39 : vector<2x128xf32>
    %41 = arith.mulf %31, %39 : vector<2x128xf32>
    %42 = arith.mulf %33, %39 : vector<2x128xf32>
    %43 = arith.mulf %35, %39 : vector<2x128xf32>
    %c0_i32_27 = arith.constant 0 : i32
    %44 = vector.broadcast %c0_i32_27 : i32 to vector<2x128xi32>
    %45 = arith.cmpi eq, %16, %44 : vector<2x128xi32>
    %46 = arith.extui %45 : vector<2x128xi1> to vector<2x128xi32>
    %47 = arith.sitofp %46 : vector<2x128xi32> to vector<2x128xf32>
    %48 = arith.mulf %40, %47 : vector<2x128xf32>
    %49 = arith.addf %3, %48 : vector<2x128xf32>
    %50 = arith.mulf %40, %40 : vector<2x128xf32>
    %51 = arith.addf %7, %50 : vector<2x128xf32>
    %52 = arith.addf %11, %47 : vector<2x128xf32>
    %c1_i32 = arith.constant 1 : i32
    %53 = vector.broadcast %c1_i32 : i32 to vector<2x128xi32>
    %54 = arith.cmpi eq, %16, %53 : vector<2x128xi32>
    %55 = arith.extui %54 : vector<2x128xi1> to vector<2x128xi32>
    %56 = arith.sitofp %55 : vector<2x128xi32> to vector<2x128xf32>
    %57 = arith.mulf %41, %56 : vector<2x128xf32>
    %58 = arith.addf %4, %57 : vector<2x128xf32>
    %59 = arith.mulf %41, %41 : vector<2x128xf32>
    %60 = arith.addf %8, %59 : vector<2x128xf32>
    %61 = arith.addf %12, %56 : vector<2x128xf32>
    %c2_i32 = arith.constant 2 : i32
    %62 = vector.broadcast %c2_i32 : i32 to vector<2x128xi32>
    %63 = arith.cmpi eq, %16, %62 : vector<2x128xi32>
    %64 = arith.extui %63 : vector<2x128xi1> to vector<2x128xi32>
    %65 = arith.sitofp %64 : vector<2x128xi32> to vector<2x128xf32>
    %66 = arith.mulf %42, %65 : vector<2x128xf32>
    %67 = arith.addf %5, %66 : vector<2x128xf32>
    %68 = arith.mulf %42, %42 : vector<2x128xf32>
    %69 = arith.addf %9, %68 : vector<2x128xf32>
    %70 = arith.addf %13, %65 : vector<2x128xf32>
    %c3_i32 = arith.constant 3 : i32
    %71 = vector.broadcast %c3_i32 : i32 to vector<2x128xi32>
    %72 = arith.cmpi eq, %16, %71 : vector<2x128xi32>
    %73 = arith.extui %72 : vector<2x128xi1> to vector<2x128xi32>
    %74 = arith.sitofp %73 : vector<2x128xi32> to vector<2x128xf32>
    %75 = arith.mulf %43, %74 : vector<2x128xf32>
    %76 = arith.addf %6, %75 : vector<2x128xf32>
    %77 = arith.mulf %43, %43 : vector<2x128xf32>
    %78 = arith.addf %10, %77 : vector<2x128xf32>
    %79 = arith.addf %14, %74 : vector<2x128xf32>
    %c0_28 = arith.constant 0 : index
    %c0_29 = arith.constant 0 : index
    %c0_30 = arith.constant 0 : index
    %c0_31 = arith.constant 0 : index
    %c0_32 = arith.constant 0 : index
    %80 = vector.load %arg4[%c0_28, %c0_29, %c0_30, %c0_31, %c0_32] : memref<1x3x4x2x128xf32, #tpu.memory_space<vmem>>, vector<1x1x1x2x128xf32>
    %81 = vector.shape_cast %80 : vector<1x1x1x2x128xf32> to vector<2x128xf32>
    %82 = arith.addf %81, %49 : vector<2x128xf32>
    %c0_33 = arith.constant 0 : index
    %c0_34 = arith.constant 0 : index
    %c0_35 = arith.constant 0 : index
    %c0_36 = arith.constant 0 : index
    %c0_37 = arith.constant 0 : index
    %83 = vector.load %arg4[%c0_33, %c0_34, %c0_35, %c0_36, %c0_37] : memref<1x3x4x2x128xf32, #tpu.memory_space<vmem>>, vector<1x1x1x2x128xf32>
    %84 = vector.shape_cast %83 : vector<1x1x1x2x128xf32> to vector<2x128xf32>
    %85 = vector.shape_cast %82 : vector<2x128xf32> to vector<1x1x1x2x128xf32>
    tpu.vector_store %arg4[%c0_33, %c0_34, %c0_35, %c0_36, %c0_37], %85 {strides = array<i32>} : memref<1x3x4x2x128xf32, #tpu.memory_space<vmem>>, vector<1x1x1x2x128xf32>,
    %c0_38 = arith.constant 0 : index
    %c0_39 = arith.constant 0 : index
    %c1_40 = arith.constant 1 : index
    %c0_41 = arith.constant 0 : index
    %c0_42 = arith.constant 0 : index
    %86 = vector.load %arg4[%c0_38, %c0_39, %c1_40, %c0_41, %c0_42] : memref<1x3x4x2x128xf32, #tpu.memory_space<vmem>>, vector<1x1x1x2x128xf32>
    %87 = vector.shape_cast %86 : vector<1x1x1x2x128xf32> to vector<2x128xf32>
    %88 = arith.addf %87, %58 : vector<2x128xf32>
    %c0_43 = arith.constant 0 : index
    %c0_44 = arith.constant 0 : index
    %c1_45 = arith.constant 1 : index
    %c0_46 = arith.constant 0 : index
    %c0_47 = arith.constant 0 : index
    %89 = vector.load %arg4[%c0_43, %c0_44, %c1_45, %c0_46, %c0_47] : memref<1x3x4x2x128xf32, #tpu.memory_space<vmem>>, vector<1x1x1x2x128xf32>
    %90 = vector.shape_cast %89 : vector<1x1x1x2x128xf32> to vector<2x128xf32>
    %91 = vector.shape_cast %88 : vector<2x128xf32> to vector<1x1x1x2x128xf32>
    tpu.vector_store %arg4[%c0_43, %c0_44, %c1_45, %c0_46, %c0_47], %91 {strides = array<i32>} : memref<1x3x4x2x128xf32, #tpu.memory_space<vmem>>, vector<1x1x1x2x128xf32>,
    %c0_48 = arith.constant 0 : index
    %c0_49 = arith.constant 0 : index
    %c2_50 = arith.constant 2 : index
    %c0_51 = arith.constant 0 : index
    %c0_52 = arith.constant 0 : index
    %92 = vector.load %arg4[%c0_48, %c0_49, %c2_50, %c0_51, %c0_52] : memref<1x3x4x2x128xf32, #tpu.memory_space<vmem>>, vector<1x1x1x2x128xf32>
    %93 = vector.shape_cast %92 : vector<1x1x1x2x128xf32> to vector<2x128xf32>
    %94 = arith.addf %93, %67 : vector<2x128xf32>
    %c0_53 = arith.constant 0 : index
    %c0_54 = arith.constant 0 : index
    %c2_55 = arith.constant 2 : index
    %c0_56 = arith.constant 0 : index
    %c0_57 = arith.constant 0 : index
    %95 = vector.load %arg4[%c0_53, %c0_54, %c2_55, %c0_56, %c0_57] : memref<1x3x4x2x128xf32, #tpu.memory_space<vmem>>, vector<1x1x1x2x128xf32>
    %96 = vector.shape_cast %95 : vector<1x1x1x2x128xf32> to vector<2x128xf32>
    %97 = vector.shape_cast %94 : vector<2x128xf32> to vector<1x1x1x2x128xf32>
    tpu.vector_store %arg4[%c0_53, %c0_54, %c2_55, %c0_56, %c0_57], %97 {strides = array<i32>} : memref<1x3x4x2x128xf32, #tpu.memory_space<vmem>>, vector<1x1x1x2x128xf32>,
    %c0_58 = arith.constant 0 : index
    %c0_59 = arith.constant 0 : index
    %c3_60 = arith.constant 3 : index
    %c0_61 = arith.constant 0 : index
    %c0_62 = arith.constant 0 : index
    %98 = vector.load %arg4[%c0_58, %c0_59, %c3_60, %c0_61, %c0_62] : memref<1x3x4x2x128xf32, #tpu.memory_space<vmem>>, vector<1x1x1x2x128xf32>
    %99 = vector.shape_cast %98 : vector<1x1x1x2x128xf32> to vector<2x128xf32>
    %100 = arith.addf %99, %76 : vector<2x128xf32>
    %c0_63 = arith.constant 0 : index
    %c0_64 = arith.constant 0 : index
    %c3_65 = arith.constant 3 : index
    %c0_66 = arith.constant 0 : index
    %c0_67 = arith.constant 0 : index
    %101 = vector.load %arg4[%c0_63, %c0_64, %c3_65, %c0_66, %c0_67] : memref<1x3x4x2x128xf32, #tpu.memory_space<vmem>>, vector<1x1x1x2x128xf32>
    %102 = vector.shape_cast %101 : vector<1x1x1x2x128xf32> to vector<2x128xf32>
    %103 = vector.shape_cast %100 : vector<2x128xf32> to vector<1x1x1x2x128xf32>
    tpu.vector_store %arg4[%c0_63, %c0_64, %c3_65, %c0_66, %c0_67], %103 {strides = array<i32>} : memref<1x3x4x2x128xf32, #tpu.memory_space<vmem>>, vector<1x1x1x2x128xf32>,
    %c0_68 = arith.constant 0 : index
    %c1_69 = arith.constant 1 : index
    %c0_70 = arith.constant 0 : index
    %c0_71 = arith.constant 0 : index
    %c0_72 = arith.constant 0 : index
    %104 = vector.load %arg4[%c0_68, %c1_69, %c0_70, %c0_71, %c0_72] : memref<1x3x4x2x128xf32, #tpu.memory_space<vmem>>, vector<1x1x1x2x128xf32>
    %105 = vector.shape_cast %104 : vector<1x1x1x2x128xf32> to vector<2x128xf32>
    %106 = arith.addf %105, %51 : vector<2x128xf32>
    %c0_73 = arith.constant 0 : index
    %c1_74 = arith.constant 1 : index
    %c0_75 = arith.constant 0 : index
    %c0_76 = arith.constant 0 : index
    %c0_77 = arith.constant 0 : index
    %107 = vector.load %arg4[%c0_73, %c1_74, %c0_75, %c0_76, %c0_77] : memref<1x3x4x2x128xf32, #tpu.memory_space<vmem>>, vector<1x1x1x2x128xf32>
    %108 = vector.shape_cast %107 : vector<1x1x1x2x128xf32> to vector<2x128xf32>
    %109 = vector.shape_cast %106 : vector<2x128xf32> to vector<1x1x1x2x128xf32>
    tpu.vector_store %arg4[%c0_73, %c1_74, %c0_75, %c0_76, %c0_77], %109 {strides = array<i32>} : memref<1x3x4x2x128xf32, #tpu.memory_space<vmem>>, vector<1x1x1x2x128xf32>,
    %c0_78 = arith.constant 0 : index
    %c1_79 = arith.constant 1 : index
    %c1_80 = arith.constant 1 : index
    %c0_81 = arith.constant 0 : index
    %c0_82 = arith.constant 0 : index
    %110 = vector.load %arg4[%c0_78, %c1_79, %c1_80, %c0_81, %c0_82] : memref<1x3x4x2x128xf32, #tpu.memory_space<vmem>>, vector<1x1x1x2x128xf32>
    %111 = vector.shape_cast %110 : vector<1x1x1x2x128xf32> to vector<2x128xf32>
    %112 = arith.addf %111, %60 : vector<2x128xf32>
    %c0_83 = arith.constant 0 : index
    %c1_84 = arith.constant 1 : index
    %c1_85 = arith.constant 1 : index
    %c0_86 = arith.constant 0 : index
    %c0_87 = arith.constant 0 : index
    %113 = vector.load %arg4[%c0_83, %c1_84, %c1_85, %c0_86, %c0_87] : memref<1x3x4x2x128xf32, #tpu.memory_space<vmem>>, vector<1x1x1x2x128xf32>
    %114 = vector.shape_cast %113 : vector<1x1x1x2x128xf32> to vector<2x128xf32>
    %115 = vector.shape_cast %112 : vector<2x128xf32> to vector<1x1x1x2x128xf32>
    tpu.vector_store %arg4[%c0_83, %c1_84, %c1_85, %c0_86, %c0_87], %115 {strides = array<i32>} : memref<1x3x4x2x128xf32, #tpu.memory_space<vmem>>, vector<1x1x1x2x128xf32>,
    %c0_88 = arith.constant 0 : index
    %c1_89 = arith.constant 1 : index
    %c2_90 = arith.constant 2 : index
    %c0_91 = arith.constant 0 : index
    %c0_92 = arith.constant 0 : index
    %116 = vector.load %arg4[%c0_88, %c1_89, %c2_90, %c0_91, %c0_92] : memref<1x3x4x2x128xf32, #tpu.memory_space<vmem>>, vector<1x1x1x2x128xf32>
    %117 = vector.shape_cast %116 : vector<1x1x1x2x128xf32> to vector<2x128xf32>
    %118 = arith.addf %117, %69 : vector<2x128xf32>
    %c0_93 = arith.constant 0 : index
    %c1_94 = arith.constant 1 : index
    %c2_95 = arith.constant 2 : index
    %c0_96 = arith.constant 0 : index
    %c0_97 = arith.constant 0 : index
    %119 = vector.load %arg4[%c0_93, %c1_94, %c2_95, %c0_96, %c0_97] : memref<1x3x4x2x128xf32, #tpu.memory_space<vmem>>, vector<1x1x1x2x128xf32>
    %120 = vector.shape_cast %119 : vector<1x1x1x2x128xf32> to vector<2x128xf32>
    %121 = vector.shape_cast %118 : vector<2x128xf32> to vector<1x1x1x2x128xf32>
    tpu.vector_store %arg4[%c0_93, %c1_94, %c2_95, %c0_96, %c0_97], %121 {strides = array<i32>} : memref<1x3x4x2x128xf32, #tpu.memory_space<vmem>>, vector<1x1x1x2x128xf32>,
    %c0_98 = arith.constant 0 : index
    %c1_99 = arith.constant 1 : index
    %c3_100 = arith.constant 3 : index
    %c0_101 = arith.constant 0 : index
    %c0_102 = arith.constant 0 : index
    %122 = vector.load %arg4[%c0_98, %c1_99, %c3_100, %c0_101, %c0_102] : memref<1x3x4x2x128xf32, #tpu.memory_space<vmem>>, vector<1x1x1x2x128xf32>
    %123 = vector.shape_cast %122 : vector<1x1x1x2x128xf32> to vector<2x128xf32>
    %124 = arith.addf %123, %78 : vector<2x128xf32>
    %c0_103 = arith.constant 0 : index
    %c1_104 = arith.constant 1 : index
    %c3_105 = arith.constant 3 : index
    %c0_106 = arith.constant 0 : index
    %c0_107 = arith.constant 0 : index
    %125 = vector.load %arg4[%c0_103, %c1_104, %c3_105, %c0_106, %c0_107] : memref<1x3x4x2x128xf32, #tpu.memory_space<vmem>>, vector<1x1x1x2x128xf32>
    %126 = vector.shape_cast %125 : vector<1x1x1x2x128xf32> to vector<2x128xf32>
    %127 = vector.shape_cast %124 : vector<2x128xf32> to vector<1x1x1x2x128xf32>
    tpu.vector_store %arg4[%c0_103, %c1_104, %c3_105, %c0_106, %c0_107], %127 {strides = array<i32>} : memref<1x3x4x2x128xf32, #tpu.memory_space<vmem>>, vector<1x1x1x2x128xf32>,
    %c0_108 = arith.constant 0 : index
    %c2_109 = arith.constant 2 : index
    %c0_110 = arith.constant 0 : index
    %c0_111 = arith.constant 0 : index
    %c0_112 = arith.constant 0 : index
    %128 = vector.load %arg4[%c0_108, %c2_109, %c0_110, %c0_111, %c0_112] : memref<1x3x4x2x128xf32, #tpu.memory_space<vmem>>, vector<1x1x1x2x128xf32>
    %129 = vector.shape_cast %128 : vector<1x1x1x2x128xf32> to vector<2x128xf32>
    %130 = arith.addf %129, %52 : vector<2x128xf32>
    %c0_113 = arith.constant 0 : index
    %c2_114 = arith.constant 2 : index
    %c0_115 = arith.constant 0 : index
    %c0_116 = arith.constant 0 : index
    %c0_117 = arith.constant 0 : index
    %131 = vector.load %arg4[%c0_113, %c2_114, %c0_115, %c0_116, %c0_117] : memref<1x3x4x2x128xf32, #tpu.memory_space<vmem>>, vector<1x1x1x2x128xf32>
    %132 = vector.shape_cast %131 : vector<1x1x1x2x128xf32> to vector<2x128xf32>
    %133 = vector.shape_cast %130 : vector<2x128xf32> to vector<1x1x1x2x128xf32>
    tpu.vector_store %arg4[%c0_113, %c2_114, %c0_115, %c0_116, %c0_117], %133 {strides = array<i32>} : memref<1x3x4x2x128xf32, #tpu.memory_space<vmem>>, vector<1x1x1x2x128xf32>,
    %c0_118 = arith.constant 0 : index
    %c2_119 = arith.constant 2 : index
    %c1_120 = arith.constant 1 : index
    %c0_121 = arith.constant 0 : index
    %c0_122 = arith.constant 0 : index
    %134 = vector.load %arg4[%c0_118, %c2_119, %c1_120, %c0_121, %c0_122] : memref<1x3x4x2x128xf32, #tpu.memory_space<vmem>>, vector<1x1x1x2x128xf32>
    %135 = vector.shape_cast %134 : vector<1x1x1x2x128xf32> to vector<2x128xf32>
    %136 = arith.addf %135, %61 : vector<2x128xf32>
    %c0_123 = arith.constant 0 : index
    %c2_124 = arith.constant 2 : index
    %c1_125 = arith.constant 1 : index
    %c0_126 = arith.constant 0 : index
    %c0_127 = arith.constant 0 : index
    %137 = vector.load %arg4[%c0_123, %c2_124, %c1_125, %c0_126, %c0_127] : memref<1x3x4x2x128xf32, #tpu.memory_space<vmem>>, vector<1x1x1x2x128xf32>
    %138 = vector.shape_cast %137 : vector<1x1x1x2x128xf32> to vector<2x128xf32>
    %139 = vector.shape_cast %136 : vector<2x128xf32> to vector<1x1x1x2x128xf32>
    tpu.vector_store %arg4[%c0_123, %c2_124, %c1_125, %c0_126, %c0_127], %139 {strides = array<i32>} : memref<1x3x4x2x128xf32, #tpu.memory_space<vmem>>, vector<1x1x1x2x128xf32>,
    %c0_128 = arith.constant 0 : index
    %c2_129 = arith.constant 2 : index
    %c2_130 = arith.constant 2 : index
    %c0_131 = arith.constant 0 : index
    %c0_132 = arith.constant 0 : index
    %140 = vector.load %arg4[%c0_128, %c2_129, %c2_130, %c0_131, %c0_132] : memref<1x3x4x2x128xf32, #tpu.memory_space<vmem>>, vector<1x1x1x2x128xf32>
    %141 = vector.shape_cast %140 : vector<1x1x1x2x128xf32> to vector<2x128xf32>
    %142 = arith.addf %141, %70 : vector<2x128xf32>
    %c0_133 = arith.constant 0 : index
    %c2_134 = arith.constant 2 : index
    %c2_135 = arith.constant 2 : index
    %c0_136 = arith.constant 0 : index
    %c0_137 = arith.constant 0 : index
    %143 = vector.load %arg4[%c0_133, %c2_134, %c2_135, %c0_136, %c0_137] : memref<1x3x4x2x128xf32, #tpu.memory_space<vmem>>, vector<1x1x1x2x128xf32>
    %144 = vector.shape_cast %143 : vector<1x1x1x2x128xf32> to vector<2x128xf32>
    %145 = vector.shape_cast %142 : vector<2x128xf32> to vector<1x1x1x2x128xf32>
    tpu.vector_store %arg4[%c0_133, %c2_134, %c2_135, %c0_136, %c0_137], %145 {strides = array<i32>} : memref<1x3x4x2x128xf32, #tpu.memory_space<vmem>>, vector<1x1x1x2x128xf32>,
    %c0_138 = arith.constant 0 : index
    %c2_139 = arith.constant 2 : index
    %c3_140 = arith.constant 3 : index
    %c0_141 = arith.constant 0 : index
    %c0_142 = arith.constant 0 : index
    %146 = vector.load %arg4[%c0_138, %c2_139, %c3_140, %c0_141, %c0_142] : memref<1x3x4x2x128xf32, #tpu.memory_space<vmem>>, vector<1x1x1x2x128xf32>
    %147 = vector.shape_cast %146 : vector<1x1x1x2x128xf32> to vector<2x128xf32>
    %148 = arith.addf %147, %79 : vector<2x128xf32>
    %c0_143 = arith.constant 0 : index
    %c2_144 = arith.constant 2 : index
    %c3_145 = arith.constant 3 : index
    %c0_146 = arith.constant 0 : index
    %c0_147 = arith.constant 0 : index
    %149 = vector.load %arg4[%c0_143, %c2_144, %c3_145, %c0_146, %c0_147] : memref<1x3x4x2x128xf32, #tpu.memory_space<vmem>>, vector<1x1x1x2x128xf32>
    %150 = vector.shape_cast %149 : vector<1x1x1x2x128xf32> to vector<2x128xf32>
    %151 = vector.shape_cast %148 : vector<2x128xf32> to vector<1x1x1x2x128xf32>
    tpu.vector_store %arg4[%c0_143, %c2_144, %c3_145, %c0_146, %c0_147], %151 {strides = array<i32>} : memref<1x3x4x2x128xf32, #tpu.memory_space<vmem>>, vector<1x1x1x2x128xf32>,
    return
  }
  func.func @transform_0(%arg0: i32, %arg1: i32) -> (i32, i32, i32, i32) {
    %c0_i32 = arith.constant 0 : i32
    %c0_i32_0 = arith.constant 0 : i32
    %c0_i32_1 = arith.constant 0 : i32
    return %arg0, %c0_i32, %arg1, %c0_i32_0 : i32, i32, i32, i32
  }
  func.func @transform_1(%arg0: i32, %arg1: i32) -> (i32, i32, i32) {
    %c0_i32 = arith.constant 0 : i32
    %c0_i32_0 = arith.constant 0 : i32
    return %arg0, %arg1, %c0_i32 : i32, i32, i32
  }
  func.func @transform_2(%arg0: i32, %arg1: i32) -> (i32, i32, i32, i32, i32) {
    %c0_i32 = arith.constant 0 : i32
    %c0_i32_0 = arith.constant 0 : i32
    %c0_i32_1 = arith.constant 0 : i32
    %c0_i32_2 = arith.constant 0 : i32
    %c0_i32_3 = arith.constant 0 : i32
    return %arg0, %c0_i32, %c0_i32_0, %c0_i32_1, %c0_i32_2 : i32, i32, i32, i32, i32
  }
}

</mosaic_0001>

<bundles_post_ra>
// kernel: tpu_custom_call.1
= control target key start
LH: loop header
LB: loop body
LE: loop exit
PB: predicated region body
PF: predicated region fallthrough
CT: control target
= control target key end

     0   :  { %7 = vsyncpa [#allocation3], 0  ;;  %s974_s0 = inlined_call_operand.hbm [shape: f32[2,4,2,128], index: 0, kind: input, shape index: {}]   ;;  %s975_s1 = inlined_call_operand.hbm [shape: s32[2,2,128], index: 1, kind: input, shape index: {}]   ;;  %s976_s2 = inlined_call_operand.hbm [shape: f32[2,3,4,2,128], index: 2, kind: output, shape index: {}]  }
   0x1   :  { %9 = vsyncpa [#allocation3 + $0x1], 0 }
   0x2   :  { %10 = vsyncpa [#allocation6], 0 }
   0x3   :  { %12 = vsyncpa [#allocation6 + $0x1], 0 }
   0x4   :  { %13 = vsyncpa [#allocation4], 0 }
   0x5   :  { %15 = vsyncpa [#allocation4 + $0x1], 0  ;;  %s758_s9 = smov 0   ;;  %s760_s10 = smov 0  }
   0x6   :  { %s762_s11 = smov 0   ;;  %s764_s12 = smov 0  }
   0x7   :  { %s766_s13 = smov 0   ;;  %s768_s14 = smov 0  }
   0x8 LB: > { %s464_s15 = sadd.s32 4294967295, %s733_s14   ;;  %s465_s16 = sadd.s32 4294967294, %s733_s14   ;;  %s733_s14 = sphi %s768_s14, %s21_s14   ;;  %s729_s13 = sphi %s766_s13, %s987_s13   ;;  %s725_s12 = sphi %s764_s12, %s986_s12   ;;  %s721_s11 = sphi %s762_s11, %s985_s11   ;;  %s717_s10 = sphi %s760_s10, %s984_s10   ;;  %s713_s9 = sphi %s758_s9, %s983_s9  }
   0x9   : > { %s33_s17 = sadd.s32 1, %s729_s13  ;;  %s42_s18 = sadd.s32 1, %s721_s11 }
   0xa   : > { %p35_p0 = scmp.ge.s32.totalorder %s33_s17, 2  ;;  %p49_p1 = scmp.ne.s32.totalorder %s721_s11, %s717_s10 }
   0xb   : > { %p50_p2 = scmp.eq.s32.totalorder %s733_s14, 0  ;;  %p55_p3 = scmp.ne.s32.totalorder %s717_s10, %s713_s9 }
   0xc   : > { %s989_s17 = smov (%p35_p0, %s33_s17), 0  ;;  %p56_p5 = scmp.eq.s32.totalorder %s464_s15, 0 }
   0xd   : > { %p799_p4 = por %p50_p2, %p49_p1  ;;  %s37_s20 = ssub.s32 %s729_s13, %s989_s17 }
   0xe   : > { %p107_p6 = scmp.eq.s32.totalorder %s464_s15, 1  ;;  %p40_p7 = scmp.eq.s32.totalorder %s37_s20, 0 }
   0xf   : > { %p805_p8 = por %p56_p5, %p55_p3  ;;  %p113_p10 = scmp.eq.s32.totalorder %s465_s16, 1 }
  0x10   : > { %p809_p9 = por %p107_p6, %p49_p1  ;;  %p467_p12 = scmp.ge.s32.totalorder %s733_s14, 2 }
  0x11   : > { %s814_s23 = scalar_select %p40_p7, %s721_s11, %s42_s18  }
  0x12   : > { %p816_p11 = por %p113_p10, %p55_p3  ;;  %p528_p13 = scmp.lt.s32.totalorder %s733_s14, 2 }
  0x13   : > { %s823_s25 = sand.u32 1, %s721_s11   ;;  %s508_s27 = sshll.u32 %s729_s13, 7 }
  0x14   : > { %s468_s26 = sshll.u32 %s823_s25, 3  ;;  %s144_s30 = scalar_lea.hbm %s974_s0, %s508_s27 }
  0x15   : > { %s137_s3 = scalar_lea.vmem [#allocation2], %s468_s26  ;;  %p832_p0 = pnand %p528_p13, %p799_p4 }
  0x16   : > { %s145_s4 = sshll.u32 %s137_s3, 4  ;;  %p473_p1 = scmp.ge.s32.totalorder %s733_s14, 1  ;;  %s146_s4 = int_to_ptr.vmem [resolvable:$true] %s145_s4 }
  0x17   : > { %s134_s6 = scalar_lea.sflag [#allocation3], %s823_s25  ;;  %p595_p2 = pneg %p832_p0 }
  0x18   : > { %s606_s7 = scalar_lea.vmem %s146_s4, 128  ;;  %s735_s8 = smov [#allocation2]  }
  0x19   : > { %p607_p3 = scmp.ne.s32.totalorder %s146_s4, %s606_s7  ;;  %s611_s15 = sshll.u32 %s735_s8, 4  ;;  %s612_s15 = int_to_ptr.vmem [resolvable:$false] %s611_s15 }
  0x1a   : > { %s613_s16 = scalar_lea.vmem %s612_s15, 256  ;;  %p614_p4 = scmp.lt.s32.totalorder %s146_s4, %s612_s15 }
  0x1b   : > { %p609_p5 = pnand %p607_p3, %p595_p2  ;;  %p615_p7 = scmp.lt.s32.totalorder %s613_s16, %s606_s7 }
  0x1d   : > { %p610_p6 = pneg %p609_p5  ;;  %p616_p10 = por %p615_p7, %p614_p4 }
  0x1f   : > { %p617_p13 = pnand %p616_p10, %p610_p6 }
  0x21   : > { %620 = shalt.err (!%p617_p13)
}
  0x22   : > { %s736_s18 = smov 32   ;;  %s737_s19 = smov 2  }
  0x23   : > { %520 = dma.hbm_to_vmem [thread:$0]  (!%p832_p0), %s144_s30, 128, %s146_s4, %s134_s6, %s736_s18, %s736_s18, %s737_s19  }
  0x24   : > { %p172_p3 = scmp.lt.s32.totalorder %s733_s14, 3  ;;  %s471_s20 = sshll.u32 %s823_s25, 1 }
  0x25   : > { %s472_s26 = sshll.u32 %s729_s13, 5  ;;  %s159_s7 = scalar_lea.vmem [#allocation5], %s471_s20 }
  0x26   : > { %p850_p5 = pnand %p473_p1, %p172_p3  ;;  %s165_s3 = scalar_lea.hbm %s975_s1, %s472_s26 }
  0x27   : > { %s167_s8 = sshll.u32 %s159_s7, 4  ;;  %s156_s15 = scalar_lea.sflag [#allocation6], %s823_s25  ;;  %s168_s8 = int_to_ptr.vmem [resolvable:$true] %s167_s8 }
  0x28   : > { %s634_s16 = scalar_lea.vmem %s168_s8, 32  ;;  %s738_s30 = smov [#allocation5]  }
  0x29   : > { %p635_p6 = scmp.ne.s32.totalorder %s168_s8, %s634_s16  ;;  %s639_s4 = sshll.u32 %s738_s30, 4  ;;  %s640_s4 = int_to_ptr.vmem [resolvable:$false] %s639_s4 }
  0x2a   : > { %s641_s6 = scalar_lea.vmem %s640_s4, 64  ;;  %p642_p1 = scmp.lt.s32.totalorder %s168_s8, %s640_s4 }
  0x2b   : > { %p637_p4 = pnand %p635_p6, %p595_p2  ;;  %p643_p10 = scmp.lt.s32.totalorder %s641_s6, %s634_s16 }
  0x2d   : > { %p638_p7 = pneg %p637_p4  ;;  %p644_p13 = por %p643_p10, %p642_p1 }
  0x2f   : > { %p645_p3 = pnand %p644_p13, %p638_p7 }
  0x31   : > { %648 = shalt.err (!%p645_p3)
}
  0x32   : > { %523 = dma.hbm_to_vmem [thread:$0]  (!%p832_p0), %s165_s3, 32, %s168_s8, %s156_s15  }
  0x33   : > { %176 = sbr.rel (%p850_p5) target bundleno = 130 (0x82), region = 28  ;;  %s866_s25 = sand.u32 (!%p850_p5), 1, %s717_s10  }
  0x34   : > { %s474_s18 = sshll.u32 (!%p850_p5), %s866_s25, 3  ;;  %s179_s19 = scalar_lea.sflag (!%p850_p5), [#allocation3], %s866_s25 }
  0x35   : > { %s182_s20 = scalar_lea.vmem (!%p850_p5), [#allocation2], %s474_s18 }
  0x38   : > { %700 = dma.done.wait (%p805_p8), %s179_s19, 128  }
  0x39   : > { %702 = vsyncadd (%p805_p8), %s179_s19, 4294967168  ;;  %s475_s5 = sshll.u32 %s866_s25, 1  ;;  %s188_s26 = scalar_lea.sflag [#allocation6], %s866_s25 }
  0x3a   : > { %s191_s27 = scalar_lea.vmem [#allocation5], %s475_s5 }
  0x3b   : > { %704 = dma.done.wait (%p805_p8), %s188_s26, 32  }
  0x3c   : > { %706 = vsyncadd (%p805_p8), %s188_s26, 4294967264  ;;  %s509_s28 = smul.u32 24, %s866_s25  ;;  %v739_v0 = vmov 0.0   ;;  %v233_v1 = vld [vmem:[%s191_s27] sm:$0x3]  ;;  %s344_s15 = scalar_lea.sflag [#allocation4], %s866_s25 }
  0x3d   : > { %v234_v2 = vld [vmem:[%s182_s20] sm:$0x3]  ;;  %v476_v3 = vld [vmem:[%s182_s20 + $0x2] sm:$0x3]  ;;  %v477_v4 = vld [vmem:[%s182_s20 + $0x4] sm:$0x3] }
  0x3e   : > { %s881_s29 = scalar_lea.vmem [#allocation7], %s509_s28  ;;  %v241_v5 = vmax.f32 %v234_v2, %v476_v3  ;;  %vm264_vm0 = vcmp.eq.s32.totalorder %v233_v1, 0  ;;  %v478_v6 = vld [vmem:[%s182_s20 + $0x6] sm:$0x3]  ;;  %vm272_vm1 = vcmp.eq.s32.totalorder %v233_v1, 1  ;;  %vm280_vm2 = vcmp.eq.s32.totalorder %v233_v1, 2 }
  0x3f   : > { %221 = vst [vmem:[%s881_s29] sm:$0x3] %v739_v0  ;;  %222 = vst [vmem:[%s881_s29 + $0x2] sm:$0x3] %v739_v0  ;;  %vm288_vm3 = vcmp.eq.s32.totalorder %v233_v1, 3  ;;  %v479_v8 = vsel %vm264_vm0, 1.0, %v739_v0  ;;  %v480_v10 = vsel %vm272_vm1, 1.0, %v739_v0 }
  0x40   : > { %223 = vst [vmem:[%s881_s29 + $0x4] sm:$0x3] %v739_v0  ;;  %224 = vst [vmem:[%s881_s29 + $0x6] sm:$0x3] %v739_v0  ;;  %v242_v7 = vmax.f32 %v241_v5, %v477_v4  ;;  %v481_v11 = vsel %vm280_vm2, 1.0, %v739_v0  ;;  %v482_v12 = vsel %vm288_vm3, 1.0, %v739_v0 }
  0x41   : > { %225 = vst [vmem:[%s881_s29 + $0x8] sm:$0x3] %v739_v0  ;;  %226 = vst [vmem:[%s881_s29 + $0xa] sm:$0x3] %v739_v0  ;;  %s510_s21 = smul.u32 384, %s725_s12  ;;  %s357_s3 = sshll.u32 %s881_s29, 4  ;;  %s918_s3 = int_to_ptr.vmem [resolvable:$true] %s357_s3 }
  0x42   : > { %227 = vst [vmem:[%s881_s29 + $0xc] sm:$0x3] %v739_v0  ;;  %228 = vst [vmem:[%s881_s29 + $0xe] sm:$0x3] %v739_v0  ;;  %v243_v9 = vmax.f32 %v242_v7, %v478_v6  ;;  %s649_s16 = scalar_lea.vmem %s918_s3, 384  ;;  %s740_s30 = smov [#allocation7]  }
  0x43   : > { %229 = vst [vmem:[%s881_s29 + $0x10] sm:$0x3] %v739_v0  ;;  %230 = vst [vmem:[%s881_s29 + $0x12] sm:$0x3] %v739_v0  ;;  %s916_s8 = scalar_lea.hbm %s976_s2, %s510_s21  ;;  %p650_p8 = scmp.ne.s32.totalorder %s918_s3, %s649_s16 }
  0x44   : > { %231 = vst [vmem:[%s881_s29 + $0x14] sm:$0x3] %v739_v0  ;;  %232 = vst [vmem:[%s881_s29 + $0x16] sm:$0x3] %v739_v0  ;;  %v244_v16 = vsub.f32 %v234_v2, %v243_v9  ;;  %v247_v17 = vsub.f32 %v476_v3, %v243_v9  ;;  %v250_v18 = vsub.f32 %v477_v4, %v243_v9  ;;  %s653_s4 = sshll.u32 %s740_s30, 4  ;;  %s654_s4 = int_to_ptr.vmem [resolvable:$false] %s653_s4 }
  0x45   : > { %v253_v19 = vsub.f32 %v478_v6, %v243_v9  ;;  %p651_p0 = pnand %p650_p8, %p809_p9  ;;  %s655_s6 = scalar_lea.vmem %s654_s4, 768 }
  0x46   : > { %v245_v25 = vmul.f32 1.442695, %v244_v16  ;;  %v248_v26 = vmul.f32 1.442695, %v247_v17  ;;  %v251_v27 = vmul.f32 1.442695, %v250_v18  ;;  %p656_p5 = scmp.lt.s32.totalorder %s918_s3, %s654_s4  ;;  %p657_p6 = scmp.lt.s32.totalorder %s655_s6, %s649_s16 }
  0x47   : > { %v254_v28 = vmul.f32 1.442695, %v253_v19  ;;  %v296_v38 = vld [vmem:[%s881_s29] sm:$0x3]  ;;  %v483_v40 = vld [vmem:[%s881_s29 + $0x2] sm:$0x3]  ;;  %p652_p2 = pneg %p651_p0 }
  0x48   : > { %583 = vpow2.f32 %v245_v25  ;;  %v485_v43 = vld [vmem:[%s881_s29 + $0x4] sm:$0x3]  ;;  %v487_v44 = vld [vmem:[%s881_s29 + $0x6] sm:$0x3]  ;;  %v489_v45 = vld [vmem:[%s881_s29 + $0x8] sm:$0x3]  ;;  %p658_p4 = por %p657_p6, %p656_p5 }
  0x49   : > { %585 = vpow2.f32 %v248_v26  ;;  %v491_v50 = vld [vmem:[%s881_s29 + $0xa] sm:$0x3]  ;;  %v493_v51 = vld [vmem:[%s881_s29 + $0xc] sm:$0x3]  ;;  %v495_v52 = vld [vmem:[%s881_s29 + $0xe] sm:$0x3] }
  0x4a   : > { %v497_v13 = vld [vmem:[%s881_s29 + $0x10] sm:$0x3]  ;;  %v499_v14 = vld [vmem:[%s881_s29 + $0x12] sm:$0x3]  ;;  %587 = vpow2.f32 %v251_v27  ;;  %p659_p7 = pnand %p658_p4, %p652_p2 }
  0x4b   : > { %v501_v15 = vld [vmem:[%s881_s29 + $0x14] sm:$0x3]  ;;  %v503_v20 = vld [vmem:[%s881_s29 + $0x16] sm:$0x3]  ;;  %v329_v21 = vadd.f32 %v497_v13, %v479_v8  ;;  %v333_v22 = vadd.f32 %v499_v14, %v480_v10  ;;  %589 = vpow2.f32 %v254_v28 }
  0x4c   : > { %v337_v23 = vadd.f32 %v501_v15, %v481_v11  ;;  %v341_v24 = vadd.f32 %v503_v20, %v482_v12 }
  0x4d   : > { %498 = vst [vmem:[%s881_s29 + $0x10] sm:$0x3] %v329_v21  ;;  %500 = vst [vmem:[%s881_s29 + $0x12] sm:$0x3] %v333_v22 }
  0x4e   : > { %502 = vst [vmem:[%s881_s29 + $0x14] sm:$0x3] %v337_v23  ;;  %504 = vst [vmem:[%s881_s29 + $0x16] sm:$0x3] %v341_v24 }
  0x55   : > { %v584_v29 = vpop.eup %583 }
  0x56   : > { %v586_v30 = vpop.eup %585 }
  0x57   : > { %v588_v31 = vpop.eup %587  ;;  %v256_v32 = vadd.f32 %v586_v30, %v584_v29 }
  0x58   : > { %v590_v33 = vpop.eup %589 }
  0x59   : > { %v257_v34 = vadd.f32 %v588_v31, %v256_v32 }
  0x5b   : > { %v258_v35 = vadd.f32 %v590_v33, %v257_v34 }
  0x5d   : > { %591 = vrcp.f32 %v258_v35 }
  0x6a   : > { %v592_v36 = vpop.eup %591 }
  0x6b   : > { %v260_v37 = vmul.f32 %v592_v36, %v584_v29  ;;  %v261_v39 = vmul.f32 %v592_v36, %v586_v30  ;;  %v262_v41 = vmul.f32 %v592_v36, %v588_v31  ;;  %v263_v42 = vmul.f32 %v592_v36, %v590_v33 }
  0x6d   : > { %v267_v46 = vmul.f32 %v479_v8, %v260_v37  ;;  %v275_v47 = vmul.f32 %v480_v10, %v261_v39  ;;  %v283_v48 = vmul.f32 %v481_v11, %v262_v41  ;;  %v291_v49 = vmul.f32 %v482_v12, %v263_v42 }
  0x6e   : > { %v269_v53 = vmul.f32 %v260_v37, %v260_v37  ;;  %v277_v54 = vmul.f32 %v261_v39, %v261_v39  ;;  %v285_v55 = vmul.f32 %v262_v41, %v262_v41  ;;  %v293_v56 = vmul.f32 %v263_v42, %v263_v42 }
  0x6f   : > { %v297_v57 = vadd.f32 %v296_v38, %v267_v46  ;;  %v301_v58 = vadd.f32 %v483_v40, %v275_v47  ;;  %v305_v59 = vadd.f32 %v485_v43, %v283_v48  ;;  %v309_v60 = vadd.f32 %v487_v44, %v291_v49 }
  0x70   : > { %v313_v61 = vadd.f32 %v489_v45, %v269_v53  ;;  %v317_v62 = vadd.f32 %v491_v50, %v277_v54  ;;  %v321_v63 = vadd.f32 %v493_v51, %v285_v55  ;;  %v325_v0 = vadd.f32 %v495_v52, %v293_v56 }
  0x71   : > { %298 = vst [vmem:[%s881_s29] sm:$0x3] %v297_v57  ;;  %484 = vst [vmem:[%s881_s29 + $0x2] sm:$0x3] %v301_v58 }
  0x72   : > { %486 = vst [vmem:[%s881_s29 + $0x4] sm:$0x3] %v305_v59  ;;  %488 = vst [vmem:[%s881_s29 + $0x6] sm:$0x3] %v309_v60 }
  0x73   : > { %490 = vst [vmem:[%s881_s29 + $0x8] sm:$0x3] %v313_v61  ;;  %492 = vst [vmem:[%s881_s29 + $0xa] sm:$0x3] %v317_v62 }
  0x74   : > { %494 = vst [vmem:[%s881_s29 + $0xc] sm:$0x3] %v321_v63  ;;  %496 = vst [vmem:[%s881_s29 + $0xe] sm:$0x3] %v325_v0 }
  0x75   : > { %662 = shalt.err (!%p659_p7)
}
  0x76   : > { %s663_s18 = scalar_lea.hbm %s916_s8, 384  ;;  %s667_s5 = scalar_lea.hbm %s976_s2, 768 }
  0x77   : > { %p664_p1 = scmp.ne.s32.totalorder %s916_s8, %s663_s18  ;;  %p668_p3 = scmp.lt.s32.totalorder %s916_s8, %s976_s2 }
  0x78   : > { %p669_p8 = scmp.lt.s32.totalorder %s667_s5, %s663_s18 }
  0x79   : > { %p665_p10 = pnand %p664_p1, %p809_p9 }
  0x7a   : > { %p670_p0 = por %p669_p8, %p668_p3 }
  0x7b   : > { %p666_p13 = pneg %p665_p10 }
  0x7d   : > { %p671_p2 = pnand %p670_p0, %p666_p13 }
  0x7f   : > { %674 = shalt.err (!%p671_p2)
}
  0x80   : > { %s741_s28 = smov 32   ;;  %s742_s29 = smov 2  }
  0x81   : > { %515 = dma.vmem_to_hbm [thread:$0]  (%p809_p9), %s918_s3, 384, %s916_s8, %s344_s15, %s741_s28, %s741_s28, %s742_s29  }
  0x82 PF: > { %s372_s21 = sand.u32 1, %s713_s9   ;;  %p525_p5 = pnand %p467_p12, %p816_p11 }
  0x83   : > { %s373_s12 = scalar_lea.sflag [#allocation4], %s372_s21 }
  0x84   : > { %p526_p6 = pneg %p525_p5 }
  0x86   : > { %708 = dma.done.wait (%p526_p6), %s373_s12, 384  }
  0x87   : > { %710 = vsyncadd (%p526_p6), %s373_s12, 4294966912  ;;  %s21_s14 = sadd.s32 1, %s733_s14   ;;  %s983_s9 = smov %s717_s10 }
  0x88   : > { %p18_p4 = scmp.ge.s32.totalorder %s21_s14, 4   ;;  %s984_s10 = smov %s721_s11 }
  0x89   : > { %s985_s11 = smov %s814_s23  ;;  %s986_s12 = smov %s729_s13 }
  0x8a   : > { %s987_s13 = smov %s989_s17  ;;  %20 = sbr.rel (!%p18_p4) target bundleno = 8 (0x8), region = 104 }
  0x8f   :  { %378 = vsyncpa [#allocation3], 1 }
  0x90   :  { %380 = vsyncpa [#allocation3 + $0x1], 1 }
  0x91   :  { %381 = vsyncpa [#allocation6], 1 }
  0x92   :  { %383 = vsyncpa [#allocation6 + $0x1], 1 }
  0x93   :  { %384 = vsyncpa [#allocation4], 1 }
  0x94   :  { %386 = vsyncpa [#allocation4 + $0x1], 1 }

</bundles_post_ra>
